<compile_context>
chip_gen: v7x
topology: tpu7x:2x2x1
jax: 0.10.0
libtpu: 0.0.40
codegen_flags: <defaults>
</compile_context>

<pallas_src>
import jax
import jax.numpy as jnp
from jax.experimental import pallas as pl
from jax.experimental.pallas import tpu as pltpu


_LANE = 128
_SMALL_INPUT_BYTES = 512 * 1024          # below this, fused XLA is strictly faster
_DEFAULT_BLOCK_BYTES = 4 * 1024 * 1024   # ~4 MiB/block -> 16 MiB of double-buffering
_VMEM_LIMIT_BYTES = 32 * 1024 * 1024     # leaves headroom below v7x's 64 MiB VMEM


def _gcu_kernel(x_ref, o_ref):
    # One upcast per tile keeps the cos polynomial on the f32 VALU/EUP path
    # (no per-op bf16<->f32 converts on v5e) and matches PyTorch precision.
    x = x_ref[...].astype(jnp.float32)
    o_ref[...] = (x * jnp.cos(x)).astype(o_ref.dtype)


def _round_up(a: int, b: int) -> int:
    return ((a + b - 1) // b) * b


def _pallas_gcu_2d(x2d, *, block_rows: int, donate: bool):
    rows, lanes = x2d.shape
    grid = (pl.cdiv(rows, block_rows),)
    return pl.pallas_call(
        _gcu_kernel,
        out_shape=jax.ShapeDtypeStruct((rows, lanes), x2d.dtype),
        grid=grid,
        in_specs=[pl.BlockSpec((block_rows, lanes), lambda i: (i, 0))],
        out_specs=pl.BlockSpec((block_rows, lanes), lambda i: (i, 0)),
        compiler_params=pltpu.CompilerParams(
            dimension_semantics=("parallel",),
            vmem_limit_bytes=_VMEM_LIMIT_BYTES,
        ),
        input_output_aliases=({0: 0} if donate else {}),
    )(x2d)


def gcu(x: jax.Array, *, block_bytes: int = _DEFAULT_BLOCK_BYTES,
        force_pallas: bool = False, donate: bool = False) -> jax.Array:
    """Elementwise GCU activation x * cos(x) via a Pallas TPU kernel.

    Works for any shape; flattens to a lane-dense [rows, lanes] view with
    lanes in {1024, 512, 256, 128} chosen so no padding is needed whenever
    possible, and tiles rows across a 1D parallel grid.
    """
    if not jnp.issubdtype(x.dtype, jnp.floating):
        raise TypeError(f"gcu requires a floating dtype, got {x.dtype}")

    orig_shape = x.shape
    itemsize = jnp.dtype(x.dtype).itemsize
    n = int(x.size)
    if n == 0:
        return x

    # Small-input fast path: custom-call + reshape overhead dominates here.
    if n * itemsize < _SMALL_INPUT_BYTES and not force_pallas:
        return x * jnp.cos(x)

    # Native sublane granularity for this dtype (f32: 8, bf16/f16: 16).
    sub = max(8, 32 // itemsize)

    # Widest lane-dense last dim that divides n exactly (wide unmasked stores,
    # fewer sublane trips, and no pad/slice HBM passes). Fallback: pad to 128.
    lanes = None
    for cand in (1024, 512, 256, 128):
        if n % cand == 0:
            lanes = cand
            break

    if lanes is not None:
        rows = n // lanes
        x2d = x.reshape(rows, lanes)
        padded = False
    else:
        lanes = _LANE
        rows = pl.cdiv(n, lanes)
        pad = rows * lanes - n
        x2d = jnp.pad(x.reshape(-1), (0, pad)).reshape(rows, lanes)
        padded = True

    # Block sizing: as many rows as the VMEM byte budget allows, but keep at
    # least 2 grid steps when the input is big enough so v7x's two TensorCores
    # both get work. Ragged last blocks are handled by Pallas (OOB writes drop).
    budget_rows = max(sub, (block_bytes // (lanes * itemsize)) // sub * sub)
    if rows >= 2 * sub:
        half_rows = _round_up((rows + 1) // 2, sub)
        block_rows = min(budget_rows, half_rows)
    else:
        block_rows = rows  # tiny: single full-extent block (always legal)

    out2d = _pallas_gcu_2d(x2d, block_rows=block_rows,
                           donate=donate and not padded)

    if padded:
        return out2d.reshape(-1)[:n].reshape(orig_shape)
    return out2d.reshape(orig_shape)


if __name__ == "__main__":
    key = jax.random.PRNGKey(0)
    k0, k1, k2, k3 = jax.random.split(key, 4)

    # Primary: module's NCHW shape. Force the Pallas path (the small-input
    # fast path would otherwise handle this 8 KiB tensor in plain XLA).
    x = jax.random.normal(k0, (2, 4, 16, 16), dtype=jnp.float32)
    y = gcu(x, force_pallas=True)
    jax.block_until_ready(y)
    y_ref = x * jnp.cos(x)
    assert y.shape == x.shape and y.dtype == x.dtype
    assert jnp.allclose(y, y_ref, atol=1e-6, rtol=1e-6)

    # Larger input: exercises the natural Pallas path with a multi-step grid.
    xb = jax.random.normal(k1, (4, 8, 128, 128), dtype=jnp.float32)
    yb = gcu(xb)
    jax.block_until_ready(yb)
    assert jnp.allclose(yb, xb * jnp.cos(xb), atol=1e-6, rtol=1e-6)

    # Ragged size (not 128-divisible): exercises the pad/slice fallback.
    xo = jax.random.normal(k2, (3, 5, 7), dtype=jnp.float32)
    yo = gcu(xo, force_pallas=True)
    jax.block_until_ready(yo)
    assert jnp.allclose(yo, xo * jnp.cos(xo), atol=1e-6, rtol=1e-6)

    # bf16 input: kernel upcasts to f32 internally, casts back on store.
    xh = jax.random.normal(k3, (2, 4, 16, 16), dtype=jnp.bfloat16)
    yh = gcu(xh, force_pallas=True)
    jax.block_until_ready(yh)
    xf = xh.astype(jnp.float32)
    yh_ref = (xf * jnp.cos(xf)).astype(jnp.bfloat16)
    assert yh.dtype == jnp.bfloat16
    assert jnp.allclose(yh.astype(jnp.float32), yh_ref.astype(jnp.float32),
                        atol=1e-2, rtol=1e-2)

    print("KERNEL_OK")
</pallas_src>

<mosaic_0001>
module attributes {stable_mosaic.version = 11 : i64} {
  func.func @_gcu_kernel(%arg0: i32, %arg1: memref<2x1024xf32, #tpu.memory_space<vmem>>, %arg2: memref<2x1024xf32, #tpu.memory_space<vmem>>) attributes {dimension_semantics = [#tpu.dimension_semantics<parallel>], iteration_bounds = array<i64: 1>, scalar_prefetch = 0 : i64, scratch_operands = 0 : i64, tpu.core_type = #tpu.core_type<tc>, window_params = [{transform_indices = @transform_0, window_bounds = array<i64: 2, 1024>}, {transform_indices = @transform_1, window_bounds = array<i64: 2, 1024>}]} {
    %c0 = arith.constant 0 : index
    %c0_0 = arith.constant 0 : index
    %0 = vector.load %arg1[%c0, %c0_0] : memref<2x1024xf32, #tpu.memory_space<vmem>>, vector<2x1024xf32>
    %1 = math.cos %0 : vector<2x1024xf32>
    %2 = arith.mulf %0, %1 : vector<2x1024xf32>
    %c0_1 = arith.constant 0 : index
    %c0_2 = arith.constant 0 : index
    %3 = vector.load %arg2[%c0_1, %c0_2] : memref<2x1024xf32, #tpu.memory_space<vmem>>, vector<2x1024xf32>
    tpu.vector_store %arg2[%c0_1, %c0_2], %2 {strides = array<i32>} : memref<2x1024xf32, #tpu.memory_space<vmem>>, vector<2x1024xf32>,
    return
  }
  func.func @transform_0(%arg0: i32) -> (i32, i32) {
    %c0_i32 = arith.constant 0 : i32
    %c0_i32_0 = arith.constant 0 : i32
    return %arg0, %c0_i32 : i32, i32
  }
  func.func @transform_1(%arg0: i32) -> (i32, i32) {
    %c0_i32 = arith.constant 0 : i32
    %c0_i32_0 = arith.constant 0 : i32
    return %arg0, %c0_i32 : i32, i32
  }
}

</mosaic_0001>

<bundles_post_ra>
// kernel: tpu_custom_call.1
= control target key start
LH: loop header
LB: loop body
LE: loop exit
PB: predicated region body
PF: predicated region fallthrough
CT: control target
= control target key end

     0   :  { %6 = vsyncpa [#allocation3], 0  ;;  %s458_s0 = inlined_call_operand.hbm [shape: f32[2,1024], index: 0, kind: input, shape index: {}]   ;;  %s459_s1 = inlined_call_operand.hbm [shape: f32[2,1024], index: 1, kind: output, shape index: {}]  }
   0x1   :  { %7 = vsyncpa [#allocation4], 0  ;;  %s328_s6 = smov [#allocation2]   ;;  %s280_s10 = scalar_lea.hbm %s458_s0, 256 }
   0x2   :  { %s14_s7 = sshll.u32 %s328_s6, 4  ;;  %p281_p0 = scmp.ne.s32.totalorder %s458_s0, %s280_s10  ;;  %s15_s7 = int_to_ptr.vmem [resolvable:$true] %s14_s7 }
   0x3   :  { %p284_p1 = scmp.lt.u32.totalorder %s280_s10, %s458_s0 }
   0x5   :  { %p286_p2 = pnand %p284_p1, %p281_p0 }
   0x7   :  { %289 = shalt.err (!%p286_p2)
}
   0x8   :  { %s290_s15 = scalar_lea.vmem %s15_s7, 256  ;;  %p295_p4 = scmp.lt.s32.totalorder %s15_s7, %s15_s7 }
   0x9   :  { %p291_p3 = scmp.ne.s32.totalorder %s15_s7, %s290_s15  ;;  %p296_p5 = scmp.lt.s32.totalorder %s290_s15, %s290_s15 }
   0xb   :  { %p297_p6 = por %p296_p5, %p295_p4 }
   0xd   :  { %p298_p7 = pnand %p297_p6, %p291_p3 }
   0xf   :  { %301 = shalt.err (!%p298_p7)
}
  0x10   :  { %17 = dma.hbm_to_vmem [thread:$0]  %s458_s0, 256, %s15_s7, [#allocation3]  }
  0x11   :  { %324 = dma.done.wait [#allocation3], 256  }
  0x12   :  { %325 = vsyncadd [#allocation3], 4294967040  ;;  %v358_v0 = vld [vmem:[#allocation2] sm:$0xff]  ;;  %v360_v1 = vld [vmem:[#allocation2 + $0x8] sm:$0xff]  ;;  %v329_v24 = vmov 683565275  }
  0x13   :  { %v23_v2 = vand.u32 2147483647, %v358_v0  ;;  %v26_v3 = vand.u32 2139095040, %v358_v0  ;;  %v126_v4 = vand.u32 2147483647, %v360_v1  ;;  %v129_v5 = vand.u32 2139095040, %v360_v1 }
  0x14   :  { %v330_v26 = vmov 2475754826   ;;  %v331_v28 = vmov 2131351028   ;;  %v332_v30 = vmov 2102212464  }
  0x15   :  { %v27_v6 = vshrl.u32 %v26_v3, 23  ;;  %v30_v7 = vand.u32 8388607, %v23_v2  ;;  %v130_v8 = vshrl.u32 %v129_v5, 23  ;;  %v133_v9 = vand.u32 8388607, %v126_v4 }
  0x16   :  { %v333_v32 = vmov 920167782   ;;  %v334_v40 = vmov 1326507024   ;;  %vm25_vm14 = vcmp.lt.s32.totalorder %v358_v0, 0  ;;  %s335_s0 = smov [#allocation5]  }
  0x17   :  { %v248_v10 = vadd.s32 4294967169, %v27_v6  ;;  %v252_v11 = vadd.s32 4294967169, %v130_v8  ;;  %v31_v13 = vor.u32 8388608, %v30_v7  ;;  %v134_v14 = vor.u32 8388608, %v133_v9  ;;  %s239_s18 = sshll.u32 %s335_s0, 4  ;;  %s240_s18 = int_to_ptr.vmem [resolvable:$true] %s239_s18 }
  0x18   :  { %vm421_vm15 = vcmp.le.f32.partialorder %v23_v2, 0.7853982  ;;  %s302_s19 = scalar_lea.vmem %s240_s18, 256  ;;  %p307_p9 = scmp.lt.s32.totalorder %s240_s18, %s240_s18 }
  0x19   :  { %v33_v12 = vadd.s32 1, %v248_v10  ;;  %v136_v15 = vadd.s32 1, %v252_v11  ;;  %v370_v20 = vshll.u32 %v31_v13, 8  ;;  %v372_v22 = vshll.u32 %v134_v14, 8  ;;  %p303_p8 = scmp.ne.s32.totalorder %s240_s18, %s302_s19  ;;  %p308_p10 = scmp.lt.s32.totalorder %s302_s19, %s302_s19 }
  0x1b   :  { %vm34_vm0 = vcmp.gt.s32.totalorder %v33_v12, 0  ;;  %vm137_vm1 = vcmp.gt.s32.totalorder %v136_v15, 0  ;;  %p309_p11 = por %p308_p10, %p307_p9 }
  0x1c   :  { %v35_v16 = vsel %vm34_vm0, %v33_v12, 0  ;;  %v138_v19 = vsel %vm137_vm1, %v136_v15, 0  ;;  %vm128_vm0 = vcmp.lt.s32.totalorder %v360_v1, 0  ;;  %vm433_vm1 = vcmp.le.f32.partialorder %v126_v4, 0.7853982 }
  0x1d   :  { %v36_v17 = vshrl.u32 %v35_v16, 5  ;;  %v37_v18 = vand.u32 31, %v35_v16  ;;  %v140_v21 = vand.u32 31, %v138_v19  ;;  %v374_v34 = vshrl.u32 %v138_v19, 5  ;;  %p310_p12 = pnand %p309_p11, %p303_p8 }
  0x1f   :  { %v38_v23 = vsub.s32 32, %v37_v18  ;;  %v40_v25 = vshll.u32 %v329_v24, %v37_v18  ;;  %v43_v27 = vshll.u32 %v330_v26, %v37_v18  ;;  %v46_v29 = vshll.u32 %v331_v28, %v37_v18 }
  0x20   :  { %v49_v31 = vshll.u32 %v332_v30, %v37_v18  ;;  %v52_v33 = vshll.u32 %v333_v32, %v37_v18  ;;  %vm55_vm2 = vcmp.lt.s32.totalorder %v36_v17, 1  ;;  %vm56_vm3 = vcmp.lt.s32.totalorder %v36_v17, 2 }
  0x21   :  { %v39_v35 = vshrl.u32 %v329_v24, %v38_v23  ;;  %v41_v36 = vshrl.u32 %v330_v26, %v38_v23  ;;  %v44_v37 = vshrl.u32 %v331_v28, %v38_v23  ;;  %v47_v38 = vshrl.u32 %v332_v30, %v38_v23 }
  0x22   :  { %v50_v39 = vshrl.u32 %v333_v32, %v38_v23  ;;  %v53_v41 = vshrl.u32 %v334_v40, %v38_v23  ;;  %vm58_vm4 = vcmp.lt.s32.totalorder %v36_v17, 4  ;;  %v141_v45 = vsub.s32 32, %v140_v21 }
  0x23   :  { %v42_v42 = vor.u32 %v41_v36, %v40_v25  ;;  %v45_v43 = vor.u32 %v44_v37, %v43_v27  ;;  %v48_v44 = vor.u32 %v47_v38, %v46_v29  ;;  %vm57_vm5 = vcmp.lt.s32.totalorder %v36_v17, 3 }
  0x24   :  { %v51_v46 = vor.u32 %v50_v39, %v49_v31  ;;  %v54_v47 = vor.u32 %v53_v41, %v52_v33  ;;  %v143_v48 = vshll.u32 %v329_v24, %v140_v21  ;;  %v146_v56 = vshll.u32 %v330_v26, %v140_v21 }
  0x25   :  { %v59_v49 = vsel %vm55_vm2, %v39_v35, %v42_v42  ;;  %v60_v50 = vsel %vm58_vm4, %v48_v44, 2102212464  ;;  %v63_v51 = vsel %vm55_vm2, %v42_v42, %v45_v43  ;;  %v67_v52 = vsel %vm55_vm2, %v45_v43, %v48_v44 }
  0x26   :  { %v61_v53 = vsel %vm57_vm5, %v45_v43, %v60_v50  ;;  %v64_v54 = vsel %vm58_vm4, %v51_v46, 920167782  ;;  %v68_v55 = vsel %vm58_vm4, %v54_v47, 1326507024  ;;  %v142_v59 = vshrl.u32 %v329_v24, %v141_v45 }
  0x27   :  { %v65_v57 = vsel %vm57_vm5, %v48_v44, %v64_v54  ;;  %v69_v58 = vsel %vm57_vm5, %v51_v46, %v68_v55  ;;  %v144_v60 = vshrl.u32 %v330_v26, %v141_v45  ;;  %v62_v61 = vsel %vm56_vm3, %v59_v49, %v61_v53 }
  0x28   :  { %v66_v62 = vsel %vm56_vm3, %v63_v51, %v65_v57  ;;  %v70_v63 = vsel %vm56_vm3, %v67_v52, %v69_v58  ;;  %v147_v3 = vshrl.u32 %v331_v28, %v141_v45  ;;  %v149_v11 = vshll.u32 %v331_v28, %v140_v21 }
  0x29   :  { %v383_v5 = vmul.u32.u64.low %v370_v20, %v70_v63  ;;  %v384_v6 = vmul.u32.u64.high %v370_v20, %v70_v63, %v383_v5  ;;  %v387_v7 = vmul.u32.u64.low %v370_v20, %v66_v62  ;;  %v388_v8 = vmul.u32.u64.high %v370_v20, %v66_v62, %v387_v7 }
  0x2a   :  { %v145_v9 = vor.u32 %v144_v60, %v143_v48  ;;  %v148_v10 = vor.u32 %v147_v3, %v146_v56  ;;  %v150_v12 = vshrl.u32 %v332_v30, %v141_v45  ;;  %v152_v13 = vshll.u32 %v332_v30, %v140_v21 }
  0x2b   :  { %v153_v14 = vshrl.u32 %v333_v32, %v141_v45  ;;  %v155_v15 = vshll.u32 %v333_v32, %v140_v21  ;;  %v156_v16 = vshrl.u32 %v334_v40, %v141_v45  ;;  %v78_v17 = vmul.u32 %v370_v20, %v62_v61 }
  0x2c   :  { %v151_v18 = vor.u32 %v150_v12, %v149_v11  ;;  %vm158_vm6 = vcmp.lt.s32.totalorder %v374_v34, 1  ;;  %vm159_vm7 = vcmp.lt.s32.totalorder %v374_v34, 2  ;;  %vm80_vm8 = vc.u32 %v384_v6, %v387_v7 }
  0x2d   :  { %v81_v19 = vadd.s32 1, %v388_v8  ;;  %v154_v23 = vor.u32 %v153_v14, %v152_v13  ;;  %vm160_vm9 = vcmp.lt.s32.totalorder %v374_v34, 3  ;;  %v157_v24 = vor.u32 %v156_v16, %v155_v15 }
  0x2e   :  { %vm161_vm10 = vcmp.lt.s32.totalorder %v374_v34, 4  ;;  %v162_v25 = vsel %vm158_vm6, %v142_v59, %v145_v9  ;;  %v166_v21 = vsel %vm158_vm6, %v145_v9, %v148_v10  ;;  %v170_v28 = vsel %vm158_vm6, %v148_v10, %v151_v18 }
  0x2f   :  { %v82_v26 = vsel %vm80_vm8, %v81_v19, %v388_v8  ;;  %v163_v20 = vsel %vm161_vm10, %v151_v18, 2102212464  ;;  %v167_v27 = vsel %vm161_vm10, %v154_v23, 920167782  ;;  %v171_v32 = vsel %vm161_vm10, %v157_v24, 1326507024 }
  0x30   :  { %v83_v29 = vadd.s32 %v82_v26, %v78_v17  ;;  %v164_v30 = vsel %vm160_vm9, %v148_v10, %v163_v20  ;;  %v168_v31 = vsel %vm160_vm9, %v151_v18, %v167_v27  ;;  %v172_v36 = vsel %vm160_vm9, %v154_v23, %v171_v32 }
  0x31   :  { %v165_v33 = vsel %vm159_vm7, %v162_v25, %v164_v30  ;;  %v169_v35 = vsel %vm159_vm7, %v166_v21, %v168_v31  ;;  %v173_v38 = vsel %vm159_vm7, %v170_v28, %v172_v36  ;;  %v79_v57 = vadd.s32 %v387_v7, %v384_v6 }
  0x32   :  { %v84_v37 = vadd.s32 536870912, %v83_v29  ;;  %v405_v39 = vmul.u32.u64.low %v372_v22, %v169_v35  ;;  %v406_v40 = vmul.u32.u64.high %v372_v22, %v169_v35, %v405_v39  ;;  %v181_v44 = vmul.u32 %v372_v22, %v165_v33 }
  0x33   :  { %v409_v41 = vmul.u32.u64.low %v372_v22, %v173_v38  ;;  %v410_v42 = vmul.u32.u64.high %v372_v22, %v173_v38, %v409_v41  ;;  %vm115_vm5 = vweird.f32 %v358_v0  ;;  %vm218_vm9 = vweird.f32 %v360_v1 }
  0x34   :  { %v85_v43 = vshrl.u32 %v84_v37, 30  ;;  %v184_v46 = vadd.s32 1, %v406_v40 }
  0x35   :  { %vm183_vm11 = vc.u32 %v410_v42, %v405_v39  ;;  %v182_v13 = vadd.s32 %v405_v39, %v410_v42 }
  0x36   :  { %v86_v45 = vshll.u32 %v85_v43, 30  ;;  %v185_v34 = vsel %vm183_vm11, %v184_v46, %v406_v40  ;;  %v109_v25 = vsub.s32 4, %v85_v43 }
  0x37   :  { %v186_v48 = vadd.s32 %v185_v34, %v181_v44 }
  0x38   :  { %v87_v47 = vsub.s32 %v83_v29, %v86_v45  ;;  %v110_v30 = vsel %vm25_vm14, %v109_v25, %v85_v43 }
  0x39   :  { %v187_v50 = vadd.s32 536870912, %v186_v48  ;;  %v112_v2 = vsel %vm421_vm15, 0, %v110_v30 }
  0x3a   :  { %v89_v49 = vsub.s32 0, %v87_v47  ;;  %v116_v37 = vand.u32 3, %v112_v2 }
  0x3b   :  { %v188_v52 = vshrl.u32 %v187_v50, 30 }
  0x3c   :  { %v249_v51 = vmin.u32 %v89_v49, %v87_v47  ;;  %vm121_vm2 = vcmp.eq.s32.totalorder %v116_v37, 2  ;;  %vm118_vm3 = vcmp.eq.s32.totalorder %v116_v37, 0  ;;  %vm117_vm4 = vcmp.lt.s32.totalorder %v116_v37, 2 }
  0x3d   :  { %v189_v54 = vshll.u32 %v188_v52, 30  ;;  %v212_v36 = vsub.s32 4, %v188_v52 }
  0x3e   :  { %v91_v53 = vclz %v249_v51 }
  0x3f   :  { %v190_v56 = vsub.s32 %v186_v48, %v189_v54  ;;  %v213_v40 = vsel %vm128_vm0, %v212_v36, %v188_v52 }
  0x40   :  { %v250_v55 = vadd.s32 4294967294, %v91_v53  ;;  %v215_v44 = vsel %vm433_vm1, 0, %v213_v40 }
  0x41   :  { %v192_v58 = vsub.s32 0, %v190_v56  ;;  %v219_v34 = vand.u32 3, %v215_v44 }
  0x42   :  { %vm251_vm12 = vcmp.lt.s32.totalorder %v250_v55, 0 }
  0x43   :  { %v94_v22 = vsel %vm251_vm12, 0, %v250_v55  ;;  %v253_v62 = vmin.u32 %v192_v58, %v190_v56  ;;  %vm224_vm6 = vcmp.eq.s32.totalorder %v219_v34, 2  ;;  %vm221_vm7 = vcmp.eq.s32.totalorder %v219_v34, 0 }
  0x44   :  { %v95_v59 = vsub.s32 32, %v94_v22  ;;  %v96_v60 = vshll.u32 %v87_v47, %v94_v22  ;;  %v99_v61 = vsub.s32 4294967266, %v94_v22  ;;  %vm220_vm8 = vcmp.lt.s32.totalorder %v219_v34, 2 }
  0x45   :  { %v194_v5 = vclz %v253_v62 }
  0x46   :  { %v97_v63 = vshrl.u32 %v79_v57, %v95_v59  ;;  %v100_v3 = vadd.s32 127, %v99_v61 }
  0x47   :  { %v254_v10 = vadd.s32 4294967294, %v194_v5 }
  0x48   :  { %v98_v8 = vor.u32 %v97_v63, %v96_v60  ;;  %v101_v9 = vshll.u32 %v100_v3, 23 }
  0x49   :  { %vm255_vm13 = vcmp.lt.s32.totalorder %v254_v10, 0 }
  0x4a   :  { %v102_v11 = vor.u32 4788187, %v101_v9  ;;  %v105_v12 = vcvt.s32.f32 %v98_v8  ;;  %v197_v6 = vsel %vm255_vm13, 0, %v254_v10 }
  0x4b   :  { %v198_v7 = vsub.s32 32, %v197_v6  ;;  %v199_v15 = vshll.u32 %v190_v56, %v197_v6  ;;  %v202_v16 = vsub.s32 4294967266, %v197_v6 }
  0x4c   :  { %v103_v14 = vand.u32 2147483647, %v102_v11 }
  0x4d   :  { %v200_v18 = vshrl.u32 %v182_v13, %v198_v7  ;;  %v203_v19 = vadd.s32 127, %v202_v16 }
  0x4e   :  { %v106_v17 = vmul.f32 %v105_v12, %v103_v14 }
  0x4f   :  { %v201_v21 = vor.u32 %v200_v18, %v199_v15  ;;  %v204_v26 = vshll.u32 %v203_v19, 23 }
  0x50   :  { %v107_v24 = vxor.u32 2147483648, %v106_v17 }
  0x51   :  { %v205_v28 = vor.u32 4788187, %v204_v26  ;;  %v208_v29 = vcvt.s32.f32 %v201_v21 }
  0x52   :  { %v108_v20 = vsel %vm25_vm14, %v107_v24, %v106_v17 }
  0x53   :  { %v111_v27 = vsel %vm421_vm15, %v358_v0, %v108_v20  ;;  %v206_v31 = vand.u32 2147483647, %v205_v28 }
  0x54   :  { %272 = vcosq.f32 %v111_v27 }
  0x55   :  { %274 = vsinq.f32 %v111_v27  ;;  %v209_v32 = vmul.f32 %v208_v29, %v206_v31 }
  0x57   :  { %v210_v35 = vxor.u32 2147483648, %v209_v32 }
  0x59   :  { %v211_v38 = vsel %vm128_vm0, %v210_v35, %v209_v32 }
  0x5a   :  { %v214_v39 = vsel %vm433_vm1, %v360_v1, %v211_v38 }
  0x5b   :  { %276 = vcosq.f32 %v214_v39 }
  0x5c   :  { %278 = vsinq.f32 %v214_v39 }
  0x5e   :  { %v273_v41 = vpop.eup %272 }
  0x5f   :  { %v275_v42 = vpop.eup %274  ;;  %v122_v43 = vxor.u32 2147483648, %v273_v41 }
  0x60   :  { %v119_v4 = vxor.u32 2147483648, %v275_v42 }
  0x61   :  { %v123_v45 = vsel %vm121_vm2, %v122_v43, %v275_v42 }
  0x62   :  { %v120_v46 = vsel %vm118_vm3, %v273_v41, %v119_v4 }
  0x63   :  { %v124_v47 = vsel %vm117_vm4, %v120_v46, %v123_v45 }
  0x64   :  { %v125_v48 = vsel %vm115_vm5, nan, %v124_v47 }
  0x65   :  { %v229_v49 = vmul.f32 %v125_v48, %v358_v0  ;;  %v277_v50 = vpop.eup %276 }
  0x66   :  { %v279_v51 = vpop.eup %278  ;;  %v225_v52 = vxor.u32 2147483648, %v277_v50 }
  0x67   :  { %231 = vst [vmem:[#allocation5] sm:$0xff] %v229_v49  ;;  %v222_v53 = vxor.u32 2147483648, %v279_v51 }
  0x68   :  { %v226_v54 = vsel %vm224_vm6, %v225_v52, %v279_v51 }
  0x69   :  { %v223_v55 = vsel %vm221_vm7, %v277_v50, %v222_v53 }
  0x6a   :  { %v227_v56 = vsel %vm220_vm8, %v223_v55, %v226_v54 }
  0x6b   :  { %v228_v57 = vsel %vm218_vm9, nan, %v227_v56 }
  0x6c   :  { %v230_v22 = vmul.f32 %v228_v57, %v360_v1 }
  0x6e   :  { %232 = vst [vmem:[#allocation5 + $0x8] sm:$0xff] %v230_v22 }
  0x6f   :  { %313 = shalt.err (!%p310_p12)
}
  0x70   :  { %s314_s22 = scalar_lea.hbm %s459_s1, 256 }
  0x71   :  { %p315_p13 = scmp.ne.s32.totalorder %s459_s1, %s314_s22  ;;  %p318_p0 = scmp.lt.u32.totalorder %s314_s22, %s459_s1 }
  0x73   :  { %p320_p1 = pnand %p318_p0, %p315_p13 }
  0x75   :  { %323 = shalt.err (!%p320_p1)
}
  0x76   :  { %242 = dma.vmem_to_hbm [thread:$0]  %s240_s18, 256, %s459_s1, [#allocation4]  }
  0x77   :  { %326 = dma.done.wait [#allocation4], 256  }
  0x78   :  { %327 = vsyncadd [#allocation4], 4294967040 }
  0x79   :  { %246 = vsyncpa [#allocation3], 1 }
  0x7a   :  { %247 = vsyncpa [#allocation4], 1 }

</bundles_post_ra>
